<compile_context>
chip_gen: v7x
topology: tpu7x:2x2x1
jax: 0.10.0
libtpu: 0.0.40
codegen_flags: <defaults>
</compile_context>

<pallas_src>
import functools

import jax
import jax.numpy as jnp
from jax.experimental import pallas as pl
from jax.experimental.pallas import tpu as pltpu


def _round_up(x, m):
    return ((x + m - 1) // m) * m


def _mlp_critic_kernel(x_ref, w1_ref, b1_ref, w2_ref, b2_ref, w3_ref, b3_ref,
                       o_ref, *, tanh_bf16):
    """Fused 3-layer critic MLP for one batch tile.

    x_ref  : (block_b, D)  obs tile, native dtype (cast to bf16 in-kernel)
    w1_ref : (D, H1)       bf16
    b1_ref : (1, H1)       f32
    w2_ref : (H1, H2)      bf16
    b2_ref : (1, H2)       f32
    w3_ref : (H2, 1)       bf16
    b3_ref : (1,)          f32   SMEM scalar
    o_ref  : (block_b, 1)  f32   critic values for this tile
    """
    x = x_ref[...].astype(jnp.bfloat16)

    a1 = (jnp.dot(x, w1_ref[...], preferred_element_type=jnp.float32)
          + b1_ref[...])
    if tanh_bf16:
        h1 = jnp.tanh(a1.astype(jnp.bfloat16))          # bf16 EUP (v6e/v7x)
    else:
        h1 = jnp.tanh(a1).astype(jnp.bfloat16)          # f32 EUP (v5e)

    a2 = (jnp.dot(h1, w2_ref[...], preferred_element_type=jnp.float32)
          + b2_ref[...])
    if tanh_bf16:
        h2 = jnp.tanh(a2.astype(jnp.bfloat16))
    else:
        h2 = jnp.tanh(a2).astype(jnp.bfloat16)

    # Natural-layout MXU matmul -> (block_b, 1) column; no transposed
    # contraction / whole-tile XLU transpose.
    v = jnp.dot(h2, w3_ref[...], preferred_element_type=jnp.float32)
    o_ref[...] = v + b3_ref[0]


def _tpu_kind():
    try:
        return jax.devices()[0].device_kind.lower()
    except Exception:
        return ""


def _vmem_cap_bytes(kind):
    """~3/4 of physical VMEM: ~48 MiB on v7x, ~96 MiB on v5e/v6e."""
    try:
        phys = int(pltpu.get_tpu_info().vmem_capacity_bytes)
    except Exception:
        phys = (64 << 20) if ("v7" in kind or "7x" in kind) else (128 << 20)
    return (phys * 3) // 4


def _choose_block_b(B, D, H1, H2, vmem_cap):
    """Largest batch tile that fits the VMEM budget, keeping >= 2 grid steps."""
    if B <= 8:
        return B
    # Per-row footprint: double-buffered obs tile + output column, plus the
    # in-kernel bf16 obs copy and f32/bf16 activation intermediates.
    per_row = (2 * D * 4        # obs tile (native f32), double-buffered
               + 2 * 4          # output column, double-buffered
               + D * 2          # bf16 copy of x
               + 6 * H1         # h1: f32 pre-act + bf16 activation
               + 6 * H2         # h2: f32 pre-act + bf16 activation
               + 8)             # value column + slack
    fixed = (2 * ((D * H1 + H1 * H2 + H2) * 2 + (H1 + H2) * 4)  # weights/biases
             + (2 << 20))                                        # compiler slack
    vmem_rows = max((vmem_cap - fixed) // per_row, 128)
    target = max(pl.cdiv(B, 2), 8)   # keep >= 2 grid steps (v7x megacore)
    blk = int(min(vmem_rows, target, 32768))
    if blk >= 128:
        blk = (blk // 128) * 128     # lane-friendly multiple of 128
    else:
        blk = _round_up(blk, 8)      # sublane-aligned for small batches
    blk = min(blk, _round_up(B, 8))
    return max(blk, 8)


@functools.partial(jax.jit,
                   static_argnames=("block_b", "tanh_bf16", "vmem_limit"))
def _forward_impl(obs, params, *, block_b, tanh_bf16, vmem_limit):
    B, D = obs.shape
    w1, b1 = params["w1"], params["b1"]
    w2, b2 = params["w2"], params["b2"]
    w3, b3 = params["w3"], params["b3"]
    H1, H2 = w1.shape[1], w2.shape[1]
    num_blocks = pl.cdiv(B, block_b)

    # Weights are tiny; cast once per call (bf16 for the MXU), biases stay f32.
    w1_bf16 = w1.astype(jnp.bfloat16)
    w2_bf16 = w2.astype(jnp.bfloat16)
    w3_col = w3.reshape(H2, 1).astype(jnp.bfloat16)
    b1_row = b1.reshape(1, H1).astype(jnp.float32)
    b2_row = b2.reshape(1, H2).astype(jnp.float32)
    b3_vec = b3.reshape(1).astype(jnp.float32)

    kernel = functools.partial(_mlp_critic_kernel, tanh_bf16=tanh_bf16)

    out = pl.pallas_call(
        kernel,
        out_shape=jax.ShapeDtypeStruct((B, 1), jnp.float32),
        grid=(num_blocks,),
        in_specs=[
            pl.BlockSpec((block_b, D), lambda i: (i, 0)),       # obs (tiled)
            pl.BlockSpec((D, H1), lambda i: (0, 0)),            # w1
            pl.BlockSpec((1, H1), lambda i: (0, 0)),            # b1
            pl.BlockSpec((H1, H2), lambda i: (0, 0)),           # w2
            pl.BlockSpec((1, H2), lambda i: (0, 0)),            # b2
            pl.BlockSpec((H2, 1), lambda i: (0, 0)),            # w3
            pl.BlockSpec(memory_space=pltpu.MemorySpace.SMEM),  # b3 scalar
        ],
        out_specs=pl.BlockSpec((block_b, 1), lambda i: (i, 0)),
        compiler_params=pltpu.CompilerParams(
            dimension_semantics=("parallel",),
            vmem_limit_bytes=int(vmem_limit)),
    )(obs, w1_bf16, b1_row, w2_bf16, b2_row, w3_col, b3_vec)

    # (B, 1) -> (B,)  == values.squeeze(dim=1)
    return out[:, 0]


def con_obs_critic_forward(obs, params, block_b=None):
    """ConObsCritic.forward: MLP(obs) -> squeeze(dim=1).  obs: (B, D)."""
    B, D = obs.shape
    H1 = params["w1"].shape[1]
    H2 = params["w2"].shape[1]
    kind = _tpu_kind()
    vmem_cap = _vmem_cap_bytes(kind)
    if block_b is None:
        block_b = _choose_block_b(B, D, H1, H2, vmem_cap)
    else:
        block_b = max(8, min(_round_up(int(block_b), 8), _round_up(B, 8)))
    tanh_bf16 = any(s in kind for s in ("v6", "v7", "7x"))
    return _forward_impl(obs, params, block_b=int(block_b),
                         tanh_bf16=bool(tanh_bf16), vmem_limit=int(vmem_cap))


def init_params(key, observation_dim, critic_layers):
    """Synthetic init for MLP(observation_dim, critic_layers, 1).

    Weights stored as (in_features, out_features) == torch Linear.weight.T.
    """
    sizes = [observation_dim] + list(critic_layers) + [1]
    params = {}
    keys = jax.random.split(key, 2 * (len(sizes) - 1))
    for li in range(len(sizes) - 1):
        fan_in, fan_out = sizes[li], sizes[li + 1]
        wk, bk = keys[2 * li], keys[2 * li + 1]
        scale = 1.0 / jnp.sqrt(jnp.float32(fan_in))
        params[f"w{li + 1}"] = (
            jax.random.uniform(wk, (fan_in, fan_out), jnp.float32, -1.0, 1.0)
            * scale)
        params[f"b{li + 1}"] = (
            jax.random.uniform(bk, (fan_out,), jnp.float32, -1.0, 1.0) * scale)
    return params


def reference_forward_f32(obs, params):
    """Full-precision (f32) reference for the original PyTorch semantics."""
    h = jnp.tanh(obs @ params["w1"] + params["b1"])
    h = jnp.tanh(h @ params["w2"] + params["b2"])
    return (h @ params["w3"] + params["b3"])[:, 0]


if __name__ == "__main__":
    key = jax.random.PRNGKey(0)
    k_obs, k_param = jax.random.split(key)

    B = 32                  # small demo batch
    observation_dim = 32
    critic_layers = (32, 32)

    obs = jax.random.normal(k_obs, (B, observation_dim), dtype=jnp.float32)
    params = init_params(k_param, observation_dim, critic_layers)

    # Auto block_b: for B=32 this picks 16 (2 "parallel" grid steps); for
    # realistic batches it grows to thousands of rows per step within VMEM.
    values = con_obs_critic_forward(obs, params)
    values = jax.block_until_ready(values)

    ref = reference_forward_f32(obs, params)
    assert values.shape == (B,), values.shape
    max_err = float(jnp.max(jnp.abs(values - ref)))
    # Kernel uses bf16 matmuls (f32 accumulation); loose tolerance vs full f32.
    assert max_err < 5e-2, max_err
    print("KERNEL_OK")
</pallas_src>

<mosaic_0001>
module attributes {stable_mosaic.version = 11 : i64} {
  func.func @_mlp_critic_kernel(%arg0: i32, %arg1: memref<16x32xf32, #tpu.memory_space<vmem>>, %arg2: memref<32x32xbf16, #tpu.memory_space<vmem>>, %arg3: memref<1x32xf32, #tpu.memory_space<vmem>>, %arg4: memref<32x32xbf16, #tpu.memory_space<vmem>>, %arg5: memref<1x32xf32, #tpu.memory_space<vmem>>, %arg6: memref<32x1xbf16, #tpu.memory_space<vmem>>, %arg7: memref<1xf32, #tpu.memory_space<smem>>, %arg8: memref<16x1xf32, #tpu.memory_space<vmem>>) attributes {dimension_semantics = [#tpu.dimension_semantics<parallel>], iteration_bounds = array<i64: 2>, scalar_prefetch = 0 : i64, scratch_operands = 0 : i64, tpu.core_type = #tpu.core_type<tc>, window_params = [{transform_indices = @transform_0, window_bounds = array<i64: 16, 32>}, {pipeline_mode = #tpu.pipeline_mode<synchronous>, transform_indices = @transform_1, window_bounds = array<i64: 32, 32>}, {pipeline_mode = #tpu.pipeline_mode<synchronous>, transform_indices = @transform_2, window_bounds = array<i64: 1, 32>}, {pipeline_mode = #tpu.pipeline_mode<synchronous>, transform_indices = @transform_3, window_bounds = array<i64: 32, 32>}, {pipeline_mode = #tpu.pipeline_mode<synchronous>, transform_indices = @transform_4, window_bounds = array<i64: 1, 32>}, {pipeline_mode = #tpu.pipeline_mode<synchronous>, transform_indices = @transform_5, window_bounds = array<i64: 32, 1>}, {transform_indices = @transform_6, window_bounds = array<i64: 1>}, {transform_indices = @transform_7, window_bounds = array<i64: 16, 1>}]} {
    %c0 = arith.constant 0 : index
    %c0_0 = arith.constant 0 : index
    %0 = vector.load %arg1[%c0, %c0_0] : memref<16x32xf32, #tpu.memory_space<vmem>>, vector<16x32xf32>
    %1 = arith.truncf %0 : vector<16x32xf32> to vector<16x32xbf16>
    %c0_1 = arith.constant 0 : index
    %c0_2 = arith.constant 0 : index
    %2 = vector.load %arg2[%c0_1, %c0_2] : memref<32x32xbf16, #tpu.memory_space<vmem>>, vector<32x32xbf16>
    %cst = arith.constant dense<0.000000e+00> : vector<16x32xf32>
    %3 = tpu.matmul %1, %2, %cst {dimension_numbers = #tpu.dot_dimension_numbers<[1], [0], [0], [1], [0, 0, 1, 1], [], []>} : vector<16x32xbf16>, vector<32x32xbf16>, vector<16x32xf32> -> vector<16x32xf32>
    %c0_3 = arith.constant 0 : index
    %c0_4 = arith.constant 0 : index
    %4 = vector.load %arg3[%c0_3, %c0_4] : memref<1x32xf32, #tpu.memory_space<vmem>>, vector<1x32xf32>
    %5 = vector.broadcast %4 : vector<1x32xf32> to vector<16x32xf32>
    %6 = arith.addf %3, %5 : vector<16x32xf32>
    %7 = math.tanh %6 : vector<16x32xf32>
    %8 = arith.truncf %7 : vector<16x32xf32> to vector<16x32xbf16>
    %c0_5 = arith.constant 0 : index
    %c0_6 = arith.constant 0 : index
    %9 = vector.load %arg4[%c0_5, %c0_6] : memref<32x32xbf16, #tpu.memory_space<vmem>>, vector<32x32xbf16>
    %cst_7 = arith.constant dense<0.000000e+00> : vector<16x32xf32>
    %10 = tpu.matmul %8, %9, %cst_7 {dimension_numbers = #tpu.dot_dimension_numbers<[1], [0], [0], [1], [0, 0, 1, 1], [], []>} : vector<16x32xbf16>, vector<32x32xbf16>, vector<16x32xf32> -> vector<16x32xf32>
    %c0_8 = arith.constant 0 : index
    %c0_9 = arith.constant 0 : index
    %11 = vector.load %arg5[%c0_8, %c0_9] : memref<1x32xf32, #tpu.memory_space<vmem>>, vector<1x32xf32>
    %12 = vector.broadcast %11 : vector<1x32xf32> to vector<16x32xf32>
    %13 = arith.addf %10, %12 : vector<16x32xf32>
    %14 = math.tanh %13 : vector<16x32xf32>
    %15 = arith.truncf %14 : vector<16x32xf32> to vector<16x32xbf16>
    %c0_10 = arith.constant 0 : index
    %c0_11 = arith.constant 0 : index
    %16 = vector.load %arg6[%c0_10, %c0_11] : memref<32x1xbf16, #tpu.memory_space<vmem>>, vector<32x1xbf16>
    %cst_12 = arith.constant dense<0.000000e+00> : vector<16x1xf32>
    %17 = tpu.matmul %15, %16, %cst_12 {dimension_numbers = #tpu.dot_dimension_numbers<[1], [0], [0], [1], [0, 0, 1, 1], [], []>} : vector<16x32xbf16>, vector<32x1xbf16>, vector<16x1xf32> -> vector<16x1xf32>
    %c0_13 = arith.constant 0 : index
    %18 = memref.load %arg7[%c0_13] : memref<1xf32, #tpu.memory_space<smem>>
    %19 = vector.broadcast %18 : f32 to vector<16x1xf32>
    %20 = arith.addf %17, %19 : vector<16x1xf32>
    %c0_14 = arith.constant 0 : index
    %c0_15 = arith.constant 0 : index
    %21 = vector.load %arg8[%c0_14, %c0_15] : memref<16x1xf32, #tpu.memory_space<vmem>>, vector<16x1xf32>
    tpu.vector_store %arg8[%c0_14, %c0_15], %20 {strides = array<i32>} : memref<16x1xf32, #tpu.memory_space<vmem>>, vector<16x1xf32>,
    return
  }
  func.func @transform_0(%arg0: i32) -> (i32, i32) {
    %c0_i32 = arith.constant 0 : i32
    %c0_i32_0 = arith.constant 0 : i32
    return %arg0, %c0_i32 : i32, i32
  }
  func.func @transform_1(%arg0: i32) -> (i32, i32) {
    %c0_i32 = arith.constant 0 : i32
    %c0_i32_0 = arith.constant 0 : i32
    %c0_i32_1 = arith.constant 0 : i32
    return %c0_i32, %c0_i32_0 : i32, i32
  }
  func.func @transform_2(%arg0: i32) -> (i32, i32) {
    %c0_i32 = arith.constant 0 : i32
    %c0_i32_0 = arith.constant 0 : i32
    %c0_i32_1 = arith.constant 0 : i32
    return %c0_i32, %c0_i32_0 : i32, i32
  }
  func.func @transform_3(%arg0: i32) -> (i32, i32) {
    %c0_i32 = arith.constant 0 : i32
    %c0_i32_0 = arith.constant 0 : i32
    %c0_i32_1 = arith.constant 0 : i32
    return %c0_i32, %c0_i32_0 : i32, i32
  }
  func.func @transform_4(%arg0: i32) -> (i32, i32) {
    %c0_i32 = arith.constant 0 : i32
    %c0_i32_0 = arith.constant 0 : i32
    %c0_i32_1 = arith.constant 0 : i32
    return %c0_i32, %c0_i32_0 : i32, i32
  }
  func.func @transform_5(%arg0: i32) -> (i32, i32) {
    %c0_i32 = arith.constant 0 : i32
    %c0_i32_0 = arith.constant 0 : i32
    %c0_i32_1 = arith.constant 0 : i32
    return %c0_i32, %c0_i32_0 : i32, i32
  }
  func.func @transform_6(%arg0: i32) -> i32 {
    %c0_i32 = arith.constant 0 : i32
    %c0_i32_0 = arith.constant 0 : i32
    return %c0_i32 : i32
  }
  func.func @transform_7(%arg0: i32) -> (i32, i32) {
    %c0_i32 = arith.constant 0 : i32
    %c0_i32_0 = arith.constant 0 : i32
    return %arg0, %c0_i32 : i32, i32
  }
}

</mosaic_0001>

<bundles_post_ra>
// kernel: _forward_impl.1
= control target key start
LH: loop header
LB: loop body
LE: loop exit
PB: predicated region body
PF: predicated region fallthrough
CT: control target
= control target key end

     0   :  { %s1529_s0 = inlined_call_operand.hbm [shape: f32[32,32], index: 0, kind: input, shape index: {}]   ;;  %s1530_s1 = inlined_call_operand.hbm [shape: bf16[32,32], index: 1, kind: input, shape index: {}]   ;;  %s1531_s2 = inlined_call_operand.hbm [shape: f32[1,32], index: 2, kind: input, shape index: {}]   ;;  %s1532_s3 = inlined_call_operand.hbm [shape: bf16[32,32], index: 3, kind: input, shape index: {}]   ;;  %s1533_s4 = inlined_call_operand.hbm [shape: f32[1,32], index: 4, kind: input, shape index: {}]   ;;  %s1534_s5 = inlined_call_operand.hbm [shape: bf16[32,1], index: 5, kind: input, shape index: {}]   ;;  %s1535_s6 = inlined_call_operand.<no memory space> [shape: f32[1], index: 6, kind: input, shape index: {}]   ;;  %s1536_s7 = inlined_call_operand.hbm [shape: f32[32,1], index: 7, kind: output, shape index: {}]  }
   0x1   :  { %12 = sst [smem:[#allocation2]] %s1535_s6 }
   0x2   :  { %13 = vsyncpa [#allocation4], 0 }
   0x3   :  { %15 = vsyncpa [#allocation4 + $0x1], 0 }
   0x4   :  { %16 = vsyncpa [#allocation7], 0 }
   0x5   :  { %17 = vsyncpa [#allocation10], 0 }
   0x6   :  { %18 = vsyncpa [#allocation13], 0 }
   0x7   :  { %19 = vsyncpa [#allocation5], 0 }
   0x8   :  { %21 = vsyncpa [#allocation5 + $0x1], 0  ;;  %s1211_s26 = smov 0   ;;  %s1213_s27 = smov 0  }
   0x9   :  { %s1215_s28 = smov 0   ;;  %s1217_s29 = smov 0  }
   0xa LB: > { %s1153_s6 = smov [#allocation6]   ;;  %s1232_s8 = sadd.s32 4294967295, %s1151_s29   ;;  %s1151_s29 = sphi %s1217_s29, %s1561_s29   ;;  %s1147_s28 = sphi %s1215_s28, %s1560_s28   ;;  %s1143_s27 = sphi %s1213_s27, %s1559_s27   ;;  %s1139_s26 = sphi %s1211_s26, %s1558_s26  }
   0xb   : > { %s222_s30 = sshll.u32 %s1153_s6, 4  ;;  %p715_p0 = scmp.ge.s32.totalorder %s1151_s29, 1  ;;  %s1237_s30 = int_to_ptr.vmem [resolvable:$true] %s222_s30 }
   0xc   : > { %p1537_p1 = scmp.eq.s32.totalorder %s1232_s8, 0  ;;  %p210_p2 = scmp.lt.s32.totalorder %s1151_s29, 3 }
   0xd   : > { %s1154_s10 = smov [#allocation9]   ;;  %s1155_s13 = smov [#allocation8]  }
   0xe   : > { %p1239_p3 = pnand %p715_p0, %p210_p2  ;;  %s246_s11 = sshll.u32 %s1154_s10, 4  ;;  %s1252_s11 = int_to_ptr.vmem [resolvable:$true] %s246_s11 }
   0xf   : > { %s236_s14 = sshll.u32 %s1155_s13, 4  ;;  %s903_s17 = scalar_lea.hbm %s1530_s1, 256  ;;  %s1254_s14 = int_to_ptr.vmem [resolvable:$true] %s236_s14 }
  0x10   : > { %s1540_s9 = scalar_select %p1239_p3, 1, 0 }
  0x11   : > { %p808_p5 = pneg %p1239_p3  ;;  %p904_p7 = scmp.ne.s32.totalorder %s1530_s1, %s903_s17 }
  0x12   : > { %p910_p11 = scmp.lt.u32.totalorder %s903_s17, %s1530_s1 }
  0x13   : > { %p1248_p6 = pnand %p808_p5, %p1537_p1 }
  0x15   : > { %p1264_p8 = pneg %p1248_p6 }
  0x17   : > { %p906_p9 = pnand %p1264_p8, %p904_p7 }
  0x19   : > { %p907_p10 = pneg %p906_p9 }
  0x1b   : > { %p912_p12 = pnand %p910_p11, %p907_p10 }
  0x1d   : > { %915 = shalt.err (!%p912_p12)
}
  0x1e   : > { %s916_s23 = scalar_lea.vmem %s1237_s30, 256  ;;  %p924_p5 = scmp.lt.s32.totalorder %s1237_s30, %s1237_s30 }
  0x1f   : > { %p917_p13 = scmp.ne.s32.totalorder %s1237_s30, %s916_s23  ;;  %p925_p4 = scmp.lt.s32.totalorder %s916_s23, %s916_s23 }
  0x21   : > { %p919_p0 = pnand %p917_p13, %p1264_p8  ;;  %p926_p7 = por %p925_p4, %p924_p5 }
  0x23   : > { %p920_p2 = pneg %p919_p0 }
  0x25   : > { %p927_p9 = pnand %p926_p7, %p920_p2 }
  0x27   : > { %930 = shalt.err (!%p927_p9)
}
  0x28   : > { %s1156_s24 = smov 64   ;;  %s1157_s25 = smov 4  }
  0x29   : > { %811 = dma.hbm_to_vmem [thread:$0]  (!%p1248_p6), %s1530_s1, 256, %s1237_s30, [#allocation7], %s1156_s24, %s1156_s24, %s1157_s25  }
  0x2a   : > { %s931_s16 = scalar_lea.hbm %s1532_s3, 256 }
  0x2b   : > { %p932_p4 = scmp.ne.s32.totalorder %s1532_s3, %s931_s16  ;;  %p938_p12 = scmp.lt.u32.totalorder %s931_s16, %s1532_s3 }
  0x2d   : > { %p934_p10 = pnand %p932_p4, %p1264_p8 }
  0x2f   : > { %p935_p11 = pneg %p934_p10 }
  0x31   : > { %p940_p13 = pnand %p938_p12, %p935_p11 }
  0x33   : > { %943 = shalt.err (!%p940_p13)
}
  0x34   : > { %s944_s30 = scalar_lea.vmem %s1252_s11, 256  ;;  %p952_p7 = scmp.lt.s32.totalorder %s1252_s11, %s1252_s11 }
  0x35   : > { %p945_p0 = scmp.ne.s32.totalorder %s1252_s11, %s944_s30  ;;  %p953_p9 = scmp.lt.s32.totalorder %s944_s30, %s944_s30 }
  0x37   : > { %p947_p2 = pnand %p945_p0, %p1264_p8  ;;  %p954_p4 = por %p953_p9, %p952_p7 }
  0x39   : > { %p948_p5 = pneg %p947_p2 }
  0x3b   : > { %p955_p10 = pnand %p954_p4, %p948_p5 }
  0x3d   : > { %958 = shalt.err (!%p955_p10)
}
  0x3e   : > { %817 = dma.hbm_to_vmem [thread:$0]  (!%p1248_p6), %s1532_s3, 256, %s1252_s11, [#allocation10], %s1156_s24, %s1156_s24, %s1157_s25  }
  0x3f   : > { %s959_s13 = scalar_lea.hbm %s1531_s2, 16 }
  0x40   : > { %p960_p11 = scmp.ne.s32.totalorder %s1531_s2, %s959_s13  ;;  %p966_p0 = scmp.lt.u32.totalorder %s959_s13, %s1531_s2 }
  0x42   : > { %p962_p12 = pnand %p960_p11, %p1264_p8 }
  0x44   : > { %p963_p13 = pneg %p962_p12 }
  0x46   : > { %p968_p2 = pnand %p966_p0, %p963_p13 }
  0x48   : > { %971 = shalt.err (!%p968_p2)
}
  0x49   : > { %s972_s11 = scalar_lea.vmem %s1254_s14, 16  ;;  %s979_s19 = scalar_lea.vmem %s1254_s14, 32 }
  0x4a   : > { %p973_p5 = scmp.ne.s32.totalorder %s1254_s14, %s972_s11  ;;  %p980_p4 = scmp.lt.s32.totalorder %s1254_s14, %s1254_s14 }
  0x4b   : > { %p981_p10 = scmp.lt.s32.totalorder %s979_s19, %s972_s11 }
  0x4c   : > { %p975_p7 = pnand %p973_p5, %p1264_p8 }
  0x4d   : > { %p982_p11 = por %p981_p10, %p980_p4 }
  0x4e   : > { %p976_p9 = pneg %p975_p7 }
  0x50   : > { %p983_p12 = pnand %p982_p11, %p976_p9 }
  0x52   : > { %986 = shalt.err (!%p983_p12)
}
  0x53   : > { %814 = dma.hbm_to_vmem [thread:$0]  (!%p1248_p6), %s1531_s2, 16, %s1254_s14, [#allocation7]  }
  0x54   : > { %s1158_s22 = smov [#allocation11]   ;;  %s1159_s6 = smov [#allocation12]  }
  0x55   : > { %s260_s23 = sshll.u32 %s1158_s22, 4  ;;  %s270_s10 = sshll.u32 %s1159_s6, 4  ;;  %s261_s23 = int_to_ptr.vmem [resolvable:$true] %s260_s23  ;;  %s271_s10 = int_to_ptr.vmem [resolvable:$true] %s270_s10 }
  0x56   : > { %s987_s16 = scalar_lea.hbm %s1533_s4, 16 }
  0x57   : > { %p988_p13 = scmp.ne.s32.totalorder %s1533_s4, %s987_s16  ;;  %p994_p5 = scmp.lt.u32.totalorder %s987_s16, %s1533_s4 }
  0x59   : > { %p990_p0 = pnand %p988_p13, %p1264_p8 }
  0x5b   : > { %p991_p2 = pneg %p990_p0 }
  0x5d   : > { %p996_p7 = pnand %p994_p5, %p991_p2 }
  0x5f   : > { %999 = shalt.err (!%p996_p7)
}
  0x60   : > { %s1000_s14 = scalar_lea.vmem %s261_s23, 16  ;;  %s1007_s21 = scalar_lea.vmem %s261_s23, 32 }
  0x61   : > { %p1001_p9 = scmp.ne.s32.totalorder %s261_s23, %s1000_s14  ;;  %p1008_p11 = scmp.lt.s32.totalorder %s261_s23, %s261_s23 }
  0x62   : > { %p1009_p12 = scmp.lt.s32.totalorder %s1007_s21, %s1000_s14 }
  0x63   : > { %p1003_p4 = pnand %p1001_p9, %p1264_p8 }
  0x64   : > { %p1010_p1 = por %p1009_p12, %p1008_p11 }
  0x65   : > { %p1004_p10 = pneg %p1003_p4 }
  0x67   : > { %p1011_p3 = pnand %p1010_p1, %p1004_p10 }
  0x69   : > { %1014 = shalt.err (!%p1011_p3)
}
  0x6a   : > { %820 = dma.hbm_to_vmem [thread:$0]  (!%p1248_p6), %s1533_s4, 16, %s261_s23, [#allocation10]  }
  0x6b   : > { %s1015_s15 = scalar_lea.hbm %s1534_s5, 256 }
  0x6c   : > { %p1016_p13 = scmp.ne.s32.totalorder %s1534_s5, %s1015_s15  ;;  %p1022_p3 = scmp.lt.u32.totalorder %s1015_s15, %s1534_s5 }
  0x6e   : > { %p1018_p0 = pnand %p1016_p13, %p1264_p8 }
  0x70   : > { %p1019_p1 = pneg %p1018_p0 }
  0x72   : > { %p1024_p2 = pnand %p1022_p3, %p1019_p1 }
  0x74   : > { %1027 = shalt.err (!%p1024_p2)
}
  0x75   : > { %s1028_s19 = scalar_lea.vmem %s271_s10, 256  ;;  %p1036_p4 = scmp.lt.s32.totalorder %s271_s10, %s271_s10 }
  0x76   : > { %p1029_p5 = scmp.ne.s32.totalorder %s271_s10, %s1028_s19  ;;  %p1037_p10 = scmp.lt.s32.totalorder %s1028_s19, %s1028_s19 }
  0x78   : > { %p1031_p7 = pnand %p1029_p5, %p1264_p8  ;;  %p1038_p11 = por %p1037_p10, %p1036_p4 }
  0x7a   : > { %p1032_p9 = pneg %p1031_p7 }
  0x7c   : > { %p1039_p12 = pnand %p1038_p11, %p1032_p9 }
  0x7e   : > { %1042 = shalt.err (!%p1039_p12)
}
  0x7f   : > { %823 = dma.hbm_to_vmem [thread:$0]  (!%p1248_p6), %s1534_s5, 256, %s271_s10, [#allocation13], %s1156_s24, %s1156_s24, %s1157_s25  }
  0x80   : > { %s714_s12 = sadd.s32 4294967294, %s1151_s29   ;;  %s1379_s20 = sadd.s32 1, %s1151_s29  }
  0x81   : > { %s34_s21 = sadd.s32 1, %s1147_s28  ;;  %s31_s30 = ssub.s32 %s1151_s29, %s1379_s20 }
  0x82   : > { %p41_p8 = scmp.ne.s32.totalorder %s1147_s28, %s1143_s27  ;;  %p32_p13 = scmp.eq.s32.totalorder %s31_s30, 0 }
  0x83   : > { %p42_p0 = scmp.eq.s32.totalorder %s1151_s29, 0  ;;  %p47_p1 = scmp.ne.s32.totalorder %s1143_s27, %s1139_s26 }
  0x84   : > { %p197_p3 = scmp.eq.s32.totalorder %s1232_s8, 1  ;;  %p1543_p5 = scmp.eq.s32.totalorder %s1232_s8, 0 }
  0x85   : > { %s1391_s22 = scalar_select %p32_p13, %s1147_s28, %s34_s21  }
  0x86   : > { %p43_p2 = por %p42_p0, %p41_p8  ;;  %p1395_p7 = por %p1543_p5, %p47_p1 }
  0x87   : > { %p1399_p6 = por %p197_p3, %p41_p8  ;;  %p203_p9 = scmp.eq.s32.totalorder %s714_s12, 1 }
  0x88   : > { %p837_p4 = scmp.lt.s32.totalorder %s1151_s29, 2  ;;  %s287_s25 = sand.u32 1, %s1147_s28  }
  0x89   : > { %s1545_s24 = scalar_select %p1399_p6, 1, 0 }
  0x8a   : > { %p1405_p10 = por %p203_p9, %p47_p1  ;;  %s722_s13 = sshll.u32 %s287_s25, 4 }
  0x8b   : > { %s749_s15 = sshll.u32 %s1151_s29, 8  ;;  %s291_s11 = scalar_lea.vmem [#allocation3], %s722_s13 }
  0x8c   : > { %s1546_s10 = scalar_select %p1405_p10, 1, 0 }
  0x8d   : > { %s1413_s18 = scalar_lea.hbm %s1529_s0, %s749_s15  ;;  %s298_s19 = sshll.u32 %s291_s11, 4  ;;  %s1419_s19 = int_to_ptr.vmem [resolvable:$true] %s298_s19 }
  0x8e   : > { %p1415_p11 = pnand %p837_p4, %p43_p2  ;;  %s1421_s14 = scalar_lea.sflag [#allocation4], %s287_s25 }
  0x8f   : > { %s1043_s12 = scalar_lea.hbm %s1413_s18, 256  ;;  %s1048_s13 = scalar_lea.hbm %s1529_s0, 512 }
  0x90   : > { %p1044_p12 = scmp.ne.s32.totalorder %s1413_s18, %s1043_s12  ;;  %p1045_p8 = pneg %p1415_p11 }
  0x91   : > { %p1049_p1 = scmp.lt.u32.totalorder %s1413_s18, %s1529_s0  ;;  %p1050_p3 = scmp.lt.u32.totalorder %s1048_s13, %s1043_s12 }
  0x92   : > { %p1046_p13 = pnand %p1045_p8, %p1044_p12  ;;  %p1052_p5 = scmp.lt.u32.totalorder %s1043_s12, %s1413_s18 }
  0x93   : > { %p1051_p2 = por %p1050_p3, %p1049_p1 }
  0x94   : > { %p1047_p0 = pneg %p1046_p13 }
  0x95   : > { %p1053_p9 = por %p1052_p5, %p1051_p2 }
  0x97   : > { %p1054_p4 = pnand %p1053_p9, %p1047_p0 }
  0x99   : > { %1057 = shalt.err (!%p1054_p4)
}
  0x9a   : > { %s1058_s25 = scalar_lea.vmem %s1419_s19, 256  ;;  %s1160_s17 = smov [#allocation3]  }
  0x9b   : > { %p1059_p12 = scmp.ne.s32.totalorder %s1419_s19, %s1058_s25  ;;  %s1063_s11 = sshll.u32 %s1160_s17, 4  ;;  %s1064_s11 = int_to_ptr.vmem [resolvable:$false] %s1063_s11 }
  0x9c   : > { %s1065_s21 = scalar_lea.vmem %s1064_s11, 512  ;;  %p1066_p6 = scmp.lt.s32.totalorder %s1419_s19, %s1064_s11 }
  0x9d   : > { %p1061_p13 = pnand %p1059_p12, %p1045_p8  ;;  %p1067_p1 = scmp.lt.s32.totalorder %s1065_s21, %s1058_s25 }
  0x9f   : > { %p1062_p10 = pneg %p1061_p13  ;;  %p1068_p3 = por %p1067_p1, %p1066_p6 }
  0xa1   : > { %p1069_p2 = pnand %p1068_p3, %p1062_p10 }
  0xa3   : > { %1072 = shalt.err (!%p1069_p2)
}
  0xa4   : > { %s1161_s12 = smov 128   ;;  %s1162_s30 = smov 8  }
  0xa5   : > { %827 = dma.hbm_to_vmem [thread:$0]  (!%p1415_p11), %s1413_s18, 256, %s1419_s19, %s1421_s14, %s1161_s12, %s1161_s12, %s1162_s30  }
  0xa6   : > { %p1548_p8 = scmp.ne.s32.totalorder %s1540_s9, 0 }
  0xa7   : > { %s1452_s13 = sand.u32 (!%p1548_p8), 1, %s1143_s27  }
  0xa8   : > { %310 = sbr.rel (%p1548_p8) target bundleno = 885 (0x375), region = 48  ;;  %s726_s15 = sshll.u32 (!%p1548_p8), %s1452_s13, 4 }
  0xa9   : > { %s313_s16 = scalar_lea.sflag (!%p1548_p8), [#allocation4], %s1452_s13  ;;  %s316_s25 = scalar_lea.vmem (!%p1548_p8), [#allocation3], %s726_s15 }
  0xaf   : > { %1118 = dma.done.wait (%p1395_p7), %s313_s16, 256  }
  0xb0   : > { %1120 = vsyncadd (%p1395_p7), %s313_s16, 4294967040  ;;  %p1549_p6 = scmp.eq.s32.totalorder %s1232_s8, 0 }
  0xb2   : > { %1122 = dma.done.wait (%p1549_p6), [#allocation7], 272   ;;  %p1550_p10 = pmov %p1549_p6 }
  0xb3   : > { %p1551_p11 = pmov %p1549_p6 }
  0xb4   : > { %1124 = vsyncadd (%p1550_p10), [#allocation7], 4294967024 }
  0xb5   : > { %1126 = dma.done.wait (%p1551_p11), [#allocation10], 272   ;;  %p1552_p0 = pmov %p1549_p6 }
  0xb7   : > { %1128 = vsyncadd (%p1552_p0), [#allocation10], 4294967024  ;;  %p1553_p5 = pmov %p1552_p0 }
  0xb8   : > { %p1554_p9 = pmov %p1552_p0 }
  0xb9   : > { %1130 = dma.done.wait (%p1553_p5), [#allocation13], 256  }
  0xba   : > { %1132 = vsyncadd (%p1554_p9), [#allocation13], 4294967040  ;;  %v1163_v0 = vmov 0.0   ;;  %vm1164_vm0 = vmmov 0   ;;  %v889_v1 = vld [vmem:[#allocation6] sm:$0xff]   ;;  %v890_v2 = vld [vmem:[#allocation6 + $0x8] sm:$0xff]  }
  0xbb   : > { %760 = vmatprep.subr.bf16.mxu0 %v1163_v0  ;;  %764 = vmatprep.mubr.msk.bf16.mxu0 %vm1164_vm0, %v1163_v0  ;;  %v370_v3 = vld [vmem:[%s316_s25] sm:$0xff]  ;;  %v371_v4 = vld [vmem:[%s316_s25 + $0x8] sm:$0xff]  ;;  %vm396_vm1 = vcmask 261120   ;;  %s518_s9 = sld [smem:[#allocation2]]  ;;  %s366_s6 = scalar_lea.vmem [#allocation14], %s726_s15  ;;  %vm576_vm2 = vcmask 7168  }
  0xbc   : > { %768 = vmatprep.subr.bf16.mxu1 %v1163_v0  ;;  %772 = vmatprep.mubr.msk.bf16.mxu1 %vm1164_vm0, %v1163_v0  ;;  %v372_v5 = vpack.c.bf16 %v371_v4, %v370_v3  ;;  %v891_v6 = vld [vmem:[#allocation9] sm:$0xff]   ;;  %v892_v7 = vld [vmem:[#allocation9 + $0x8] sm:$0xff]   ;;  %v733_v8 = vld [vmem:[#allocation8] ss:$0 sm:$0xff]  ;;  %s593_s18 = sshll.u32 %s366_s6, 4  ;;  %s750_s19 = sshll.u32 %s1232_s8, 8  ;;  %s1480_s18 = int_to_ptr.vmem [resolvable:$true] %s593_s18 }
  0xbd   : > { %761 = vmatpush3.bf16.msra.mxu0 %v889_v1  ;;  %769 = vmatpush3.bf16.msra.mxu1 %v891_v6  ;;  %v893_v18 = vld [vmem:[#allocation12] sm:$0xff]   ;;  %v894_v19 = vld [vmem:[#allocation12 + $0x8] sm:$0xff]   ;;  %v737_v20 = vld [vmem:[#allocation11] ss:$0 sm:$0xff]  ;;  %s1485_s17 = scalar_lea.hbm %s1536_s7, %s750_s19  ;;  %s580_s8 = scalar_lea.sflag [#allocation5], %s1452_s13 }
  0xbe   : > { %762 = vmatprep.subr.bf16.mxu0 %v1163_v0  ;;  %770 = vmatprep.subr.bf16.mxu1 %v1163_v0  ;;  %s1073_s11 = scalar_lea.vmem %s1480_s18, 256  ;;  %p1555_p4 = scmp.ne.s32.totalorder %s1545_s24, 0 }
  0xbf   : > { %p1074_p7 = scmp.ne.s32.totalorder %s1480_s18, %s1073_s11  ;;  %s1165_s21 = smov [#allocation14]  }
  0xc0   : > { %s1077_s12 = sshll.u32 %s1165_s21, 4  ;;  %s1078_s12 = int_to_ptr.vmem [resolvable:$false] %s1077_s12 }
  0xc1   : > { %763 = vmatpush3.bf16.msra.mxu0 %v890_v2  ;;  %771 = vmatpush3.bf16.msra.mxu1 %v892_v7  ;;  %v519_v30 = vstv %s518_s9  ;;  %p1075_p12 = pnand %p1074_p7, %p1555_p4  ;;  %s1079_s30 = scalar_lea.vmem %s1078_s12, 512 }
  0xc2   : > { %776 = vmatprep.subr.bf16.mxu0 %v1163_v0  ;;  %p1080_p1 = scmp.lt.s32.totalorder %s1480_s18, %s1078_s12  ;;  %p1081_p3 = scmp.lt.s32.totalorder %s1079_s30, %s1073_s11 }
  0xc3   : > { %p1076_p13 = pneg %p1075_p12 }
  0xc4   : > { %765 = vmatmul.mubr.msk.bf16.vlgmr.msra.gmra.mrb[0].mxu0 %vm396_vm1, %v372_v5  ;;  %p1082_p2 = por %p1081_p3, %p1080_p1 }
  0xc5   : > { %780 = vmatprep.mubr.msk.bf16.mxu0 %vm1164_vm0, %v1163_v0  ;;  %777 = vmatpush3.bf16.msra.mxu0 %v893_v18 }
  0xc6   : > { %778 = vmatprep.subr.bf16.mxu0 %v1163_v0  ;;  %p1083_p8 = pnand %p1082_p2, %p1076_p13 }
  0xc9   : > { %779 = vmatpush3.bf16.msra.mxu0 %v894_v19 }
 0x197   : > { %v434_v9 = vpop.f32.mrb[0].mxu0 }
 0x198   : > { %v435_v10 = vadd.f32 %v733_v8, %v434_v9  ;;  %v766_v11 = vpop.f32.mrb[1].mxu0 }
 0x199   : > { %v437_v12 = vpop.f32.mrb[2].mxu0 }
 0x19a   : > { %v438_v13 = vadd.f32 %v733_v8, %v437_v12  ;;  %v767_v14 = vpop.f32.mrb[3].mxu0  ;;  %895 = vtanh.f32 %v435_v10 }
 0x19c   : > { %897 = vtanh.f32 %v438_v13 }
 0x1a4   : > { %v896_v15 = vpop.eup %895 }
 0x1a6   : > { %v898_v16 = vpop.eup %897 }
 0x1a7   : > { %v443_v17 = vpack.c.bf16 %v898_v16, %v896_v15 }
 0x1a9   : > { %773 = vmatmul.mubr.msk.bf16.vlgmr.msra.gmra.mrb[0].mxu1 %vm396_vm1, %v443_v17 }
 0x27c   : > { %v504_v21 = vpop.f32.mrb[0].mxu1 }
 0x27d   : > { %v505_v22 = vadd.f32 %v737_v20, %v504_v21  ;;  %v774_v23 = vpop.f32.mrb[1].mxu1 }
 0x27e   : > { %v507_v24 = vpop.f32.mrb[2].mxu1 }
 0x27f   : > { %v508_v25 = vadd.f32 %v737_v20, %v507_v24  ;;  %v775_v26 = vpop.f32.mrb[3].mxu1  ;;  %899 = vtanh.f32 %v505_v22 }
 0x281   : > { %901 = vtanh.f32 %v508_v25 }
 0x289   : > { %v900_v27 = vpop.eup %899 }
 0x28b   : > { %v902_v28 = vpop.eup %901 }
 0x28c   : > { %v513_v29 = vpack.c.bf16 %v902_v28, %v900_v27 }
 0x28e   : > { %781 = vmatmul.mubr.msk.bf16.vlgmr.msra.gmra.mrb[4].mxu0 %vm396_vm1, %v513_v29 }
 0x361   : > { %v569_v31 = vpop.f32.mrb[4].mxu0 }
 0x362   : > { %v570_v32 = vadd.f32 %v569_v31, %v519_v30  ;;  %v782_v33 = vpop.f32.mrb[5].mxu0 }
 0x363   : > { %v572_v34 = vpop.f32.mrb[6].mxu0 }
 0x364   : > { %577 = vst.msk [vmem:[%s366_s6] sm:$0xff] %vm576_vm2, %v570_v32  ;;  %v573_v35 = vadd.f32 %v572_v34, %v519_v30  ;;  %v783_v36 = vpop.f32.mrb[7].mxu0 }
 0x366   : > { %578 = vst.msk [vmem:[%s366_s6 + $0x8] sm:$0xff] %vm576_vm2, %v573_v35 }
 0x367   : > { %1086 = shalt.err (!%p1083_p8)
}
 0x368   : > { %s1087_s15 = scalar_lea.hbm %s1485_s17, 256  ;;  %s1091_s9 = scalar_lea.hbm %s1536_s7, 512 }
 0x369   : > { %p1088_p6 = scmp.ne.s32.totalorder %s1485_s17, %s1087_s15  ;;  %p1092_p0 = scmp.lt.u32.totalorder %s1485_s17, %s1536_s7 }
 0x36a   : > { %p1093_p5 = scmp.lt.u32.totalorder %s1091_s9, %s1087_s15  ;;  %p1095_p7 = scmp.lt.u32.totalorder %s1087_s15, %s1485_s17 }
 0x36b   : > { %p1089_p10 = pnand %p1088_p6, %p1555_p4 }
 0x36c   : > { %p1094_p9 = por %p1093_p5, %p1092_p0 }
 0x36d   : > { %p1090_p11 = pneg %p1089_p10 }
 0x36e   : > { %p1096_p12 = por %p1095_p7, %p1094_p9 }
 0x370   : > { %p1097_p13 = pnand %p1096_p12, %p1090_p11 }
 0x372   : > { %1100 = shalt.err (!%p1097_p13)
}
 0x373   : > { %s1166_s23 = smov 128   ;;  %s1167_s14 = smov 8  }
 0x374   : > { %806 = dma.vmem_to_hbm [thread:$0]  (%p1555_p4), %s1480_s18, 256, %s1485_s17, %s580_s8, %s1166_s23, %s1166_s23, %s1167_s14  }
 0x375 PF: > { %s608_s11 = sand.u32 1, %s1139_s26   ;;  %p1556_p1 = scmp.ne.s32.totalorder %s1546_s10, 0 }
 0x376   : > { %p1557_p3 = scmp.ge.s32.totalorder %s1151_s29, 2  ;;  %s609_s21 = scalar_lea.sflag [#allocation5], %s608_s11 }
 0x378   : > { %p829_p2 = pnand %p1557_p3, %p1556_p1 }
 0x37a   : > { %1134 = dma.done.wait (!%p829_p2), %s609_s21, 256  }
 0x37b   : > { %1136 = vsyncadd (!%p829_p2), %s609_s21, 4294967040  ;;  %p24_p8 = scmp.ge.s32.totalorder %s1379_s20, 4   ;;  %s1558_s26 = smov %s1143_s27 }
 0x37c   : > { %s1559_s27 = smov %s1147_s28  ;;  %s1560_s28 = smov %s1391_s22 }
 0x37d   : > { %s1561_s29 = smov %s1379_s20  ;;  %26 = sbr.rel (!%p24_p8) target bundleno = 10 (0xa), region = 113 }
 0x384   :  { %614 = vsyncpa [#allocation4], 1 }
 0x385   :  { %616 = vsyncpa [#allocation4 + $0x1], 1 }
 0x386   :  { %617 = vsyncpa [#allocation7], 1 }
 0x387   :  { %618 = vsyncpa [#allocation10], 1 }
 0x388   :  { %619 = vsyncpa [#allocation13], 1 }
 0x389   :  { %620 = vsyncpa [#allocation5], 1 }
 0x38a   :  { %622 = vsyncpa [#allocation5 + $0x1], 1 }

</bundles_post_ra>
